<compile_context>
chip_gen: v5e
topology: v5e:2x2
jax: 0.10.0
libtpu: 0.0.40
codegen_flags: <defaults>
</compile_context>

<pallas_src>
import numpy as np
import jax
import jax.numpy as jnp
from jax import lax
from jax.experimental import pallas as pl
from jax.experimental.pallas import tpu as pltpu


# ----------------------------------------------------------------------------
# Parameter construction (mirrors the PyTorch module __init__) — plain numpy.
# ----------------------------------------------------------------------------
def DCT_mat(size):
    m = [[(np.sqrt(1.0 / size) if i == 0 else np.sqrt(2.0 / size))
          * np.cos((j + 0.5) * np.pi * i / size) for j in range(size)]
         for i in range(size)]
    return np.array(m, dtype=np.float32)


def generate_filter(start, end, size):
    return np.array([[0.0 if i + j > end or i + j <= start else 1.0
                      for j in range(size)] for i in range(size)],
                    dtype=np.float32)


def build_params(S, M, key):
    """Returns (D, K, FT, filt_list, ft_nums).

    K  = kron(D, D)                       (S*S, S*S): vec(D @ P @ D^T) = K @ vec(P)
    FT[m] = filt_m / (ft_num_m * ln(10))  (M,  S*S) : log10 rescale + band
                                                      normalization folded in.
    """
    D = DCT_mat(S)                                         # (S, S)
    K = np.kron(D, D).astype(np.float32)                   # (S*S, S*S)
    keys = jax.random.split(key, M)
    inv_ln10 = np.float32(1.0 / np.log(10.0))
    filt_list, ft_nums, frows = [], [], []
    for i in range(M):
        band_start = S * 2.0 / M * i
        band_end = S * 2.0 / M * (i + 1)
        base = generate_filter(band_start, band_end, S)    # (S, S), frozen
        ft_num = float(base.sum())
        assert ft_num > 0.0, "empty frequency band (reduce M or increase S)"
        # learnable ~ N(0, 0.1), deterministic here
        learnable = 0.1 * jax.random.normal(keys[i], (S, S), dtype=jnp.float32)
        filt = jnp.asarray(base) + (2.0 * jax.nn.sigmoid(learnable) - 1.0)
        filt_list.append(filt)
        ft_nums.append(ft_num)
        # fold 1/ft_num and 1/ln(10) (natural log -> log10) into the filter row
        frows.append((filt * (inv_ln10 / np.float32(ft_num))).reshape(-1))
    FT = jnp.stack(frows, axis=0)                          # (M, S*S)
    return jnp.asarray(D), jnp.asarray(K), FT, filt_list, ft_nums


# ----------------------------------------------------------------------------
# Pallas kernel: DCT + log + per-band filtered sums for one tile of patches.
# Everything is lane-dense (patch index on the lane axis).
# ----------------------------------------------------------------------------
def lfs_core_kernel(p_ref, k_ref, ft_ref, o_ref):
    # p_ref : (S*S, tile_p)  flattened patches, patch index on lanes (bf16/f32)
    # k_ref : (S*S, S*S)     kron(D, D), same dtype as p_ref
    # ft_ref: (M,  S*S)      f32 filter rows, 1/(ft_num*ln10) folded in
    # o_ref : (M,  tile_p)   f32, lane-dense stores
    dct_t = jnp.dot(k_ref[...], p_ref[...],
                    preferred_element_type=jnp.float32)    # (S*S, tile_p) f32
    logd_t = jnp.log(jnp.abs(dct_t) + 1e-15)               # natural log; 1/ln10 in FT
    o_ref[...] = jnp.dot(ft_ref[...], logd_t,
                         preferred_element_type=jnp.float32)


# ----------------------------------------------------------------------------
# Forward wrapper
# ----------------------------------------------------------------------------
def _round_up(x, m):
    return ((x + m - 1) // m) * m


def lfs_head_forward(x, K, FT, S, M, *, compute_dtype=jnp.bfloat16, tile_p=None):
    N, C, W, H = x.shape
    assert C >= 3 and W == H, "module assumes >=3 channels and square input"
    S2 = S * S
    # Matches nn.Unfold(kernel=(S,S), stride=2, padding=4) count exactly
    # (both are floor((W + 8 - S)/2) + 1).  The original module additionally
    # asserts size_after == 149 (fixed input size); relaxed here.
    sa = (W - S + 8) // 2 + 1
    P = N * sa * sa

    # 1) gray conversion + (x + 1) * 122.5 in plain jnp: trivially memory
    #    bound, fused by XLA into the pad / slices below.
    gray = (0.299 * x[:, 0] + 0.587 * x[:, 1] + 0.114 * x[:, 2] + 1.0) * 122.5

    # 2) unfold as 64 static stride-2 slices (no gather HLO), built directly in
    #    the transposed (S*S, P) layout and in the matmul dtype.
    #    Element index e = di*S + dj matches the row-major (kh, kw) flattening
    #    of nn.Unfold and the kron(D, D) row/column ordering.
    # TODO(synk): fuse this unfold into the Pallas kernel (strip DMA + in-VMEM
    # patch build) to drop the remaining amplified intermediate from HBM.
    xp = jnp.pad(gray, ((0, 0), (4, 4), (4, 4))).astype(compute_dtype)
    cols = []
    for di in range(S):
        for dj in range(S):
            cols.append(lax.slice(
                xp,
                (0, di, dj),
                (N, di + 2 * (sa - 1) + 1, dj + 2 * (sa - 1) + 1),
                (1, 2, 2)))                                # (N, sa, sa)
    pt = jnp.stack(cols, axis=0).reshape(S2, P)            # (S*S, P)

    # 3) tile over patches: large lane tiles amortize the ~0.35 us per-step
    #    overhead; the cap keeps >= 2 grid steps so both v7x TensorCores get
    #    work, and VMEM stays ~13 MiB (bf16) / ~17 MiB (f32) at tile_p=16384.
    if tile_p is None:
        tile_p = min(16384, max(128, _round_up(-(-P // 2), 128)))
    grid = (pl.cdiv(P, tile_p),)

    p_work = grid[0] * tile_p
    in_bytes = int(np.dtype(compute_dtype).itemsize)
    cost = pl.CostEstimate(
        flops=2 * p_work * S2 * (S2 + M),
        transcendentals=p_work * S2,
        bytes_accessed=(p_work * S2 * in_bytes             # patch stream
                        + S2 * S2 * in_bytes               # K
                        + M * S2 * 4                       # FT
                        + M * p_work * 4))                 # output

    # 4) DCT + log10(|.| + eps) + per-band filtered sums  (Pallas hot path).
    out_t = pl.pallas_call(
        lfs_core_kernel,
        out_shape=jax.ShapeDtypeStruct((M, P), jnp.float32),
        grid=grid,
        in_specs=[
            pl.BlockSpec((S2, tile_p), lambda i: (0, i)),
            pl.BlockSpec((S2, S2), lambda i: (0, 0)),
            pl.BlockSpec((M, S2), lambda i: (0, 0)),
        ],
        out_specs=pl.BlockSpec((M, tile_p), lambda i: (0, i)),
        compiler_params=pltpu.CompilerParams(
            dimension_semantics=("parallel",),
            vmem_limit_bytes=48 * 1024 * 1024),            # headroom, < v7x 64 MiB
        cost_estimate=cost,
    )(pt, K.astype(compute_dtype), FT)

    out = out_t.reshape(M, N, sa, sa)
    return jnp.transpose(out, (1, 0, 2, 3))                # (N, M, sa, sa)


# ----------------------------------------------------------------------------
# Pure-JAX reference (mirrors the PyTorch forward step by step)
# ----------------------------------------------------------------------------
def ref_forward(x, D, filt_list, ft_nums, S, M):
    xg = 0.299 * x[:, 0] + 0.587 * x[:, 1] + 0.114 * x[:, 2]
    xg = (xg + 1.0) * 122.5
    N, W, H = xg.shape
    sa = (W - S + 8) // 2 + 1
    xp = jnp.pad(xg, ((0, 0), (4, 4), (4, 4)))
    base = jnp.arange(sa) * 2
    rows = base[:, None] + jnp.arange(S)[None, :]
    pat = xp[:, rows[:, None, :, None], rows[None, :, None, :]]   # (N,sa,sa,S,S)
    dct = jnp.einsum('ai,nuvij,bj->nuvab', D, pat, D,
                     precision=jax.lax.Precision.HIGHEST)
    logd = jnp.log10(jnp.abs(dct) + 1e-15)
    outs = []
    for m in range(M):
        y = jnp.sum(logd * filt_list[m][None, None, None] / ft_nums[m],
                    axis=(3, 4))
        outs.append(y)
    return jnp.stack(outs, axis=1)                                 # (N, M, sa, sa)


if __name__ == "__main__":
    key = jax.random.PRNGKey(0)
    k_in, k_par = jax.random.split(key)

    N, W, H = 2, 16, 16     # small spatial size (original uses 299x299-class)
    S, M = 8, 4             # window_size, number of frequency bands

    x = jax.random.normal(k_in, (N, 3, W, H), dtype=jnp.float32)
    D, K, FT, filt_list, ft_nums = build_params(S, M, k_par)

    ref = jax.block_until_ready(ref_forward(x, D, filt_list, ft_nums, S, M))
    sa = (W - S + 8) // 2 + 1

    # f32 path: tight elementwise check against the PyTorch-mirroring reference.
    out_f32 = jax.block_until_ready(
        lfs_head_forward(x, K, FT, S, M, compute_dtype=jnp.float32))
    assert out_f32.shape == (N, M, sa, sa), out_f32.shape
    if not np.allclose(np.asarray(out_f32), np.asarray(ref), rtol=2e-2, atol=2e-2):
        max_err = float(np.max(np.abs(np.asarray(out_f32) - np.asarray(ref))))
        raise AssertionError(f"f32 path mismatch vs reference, max abs err = {max_err}")

    # bf16 production path: log10 of near-zero DCT coefficients is inherently
    # sensitive to input quantization, so validate with robust statistics
    # (typical error ~1e-3) rather than a worst-case elementwise bound.
    out_bf16 = jax.block_until_ready(lfs_head_forward(x, K, FT, S, M))
    assert out_bf16.shape == (N, M, sa, sa), out_bf16.shape
    assert np.all(np.isfinite(np.asarray(out_bf16)))
    diff = np.abs(np.asarray(out_bf16) - np.asarray(ref))
    assert float(np.mean(diff)) < 2e-2, f"bf16 mean abs err {float(np.mean(diff))}"
    assert float(np.median(diff)) < 1e-2, f"bf16 median abs err {float(np.median(diff))}"

    print("KERNEL_OK")
</pallas_src>

<mosaic_0001>
module attributes {stable_mosaic.version = 11 : i64} {
  func.func @lfs_core_kernel(%arg0: i32, %arg1: memref<64x128xf32, #tpu.memory_space<vmem>>, %arg2: memref<64x64xf32, #tpu.memory_space<vmem>>, %arg3: memref<4x64xf32, #tpu.memory_space<vmem>>, %arg4: memref<4x128xf32, #tpu.memory_space<vmem>>) attributes {dimension_semantics = [#tpu.dimension_semantics<parallel>], iteration_bounds = array<i64: 2>, scalar_prefetch = 0 : i64, scratch_operands = 0 : i64, tpu.core_type = #tpu.core_type<tc>, window_params = [{transform_indices = @transform_0, window_bounds = array<i64: 64, 128>}, {pipeline_mode = #tpu.pipeline_mode<synchronous>, transform_indices = @transform_1, window_bounds = array<i64: 64, 64>}, {pipeline_mode = #tpu.pipeline_mode<synchronous>, transform_indices = @transform_2, window_bounds = array<i64: 4, 64>}, {transform_indices = @transform_3, window_bounds = array<i64: 4, 128>}]} {
    %c0 = arith.constant 0 : index
    %c0_0 = arith.constant 0 : index
    %0 = vector.load %arg2[%c0, %c0_0] : memref<64x64xf32, #tpu.memory_space<vmem>>, vector<64x64xf32>
    %c0_1 = arith.constant 0 : index
    %c0_2 = arith.constant 0 : index
    %1 = vector.load %arg1[%c0_1, %c0_2] : memref<64x128xf32, #tpu.memory_space<vmem>>, vector<64x128xf32>
    %cst = arith.constant dense<0.000000e+00> : vector<64x128xf32>
    %2 = tpu.matmul %0, %1, %cst {dimension_numbers = #tpu.dot_dimension_numbers<[1], [0], [0], [1], [0, 0, 1, 1], [], []>} : vector<64x64xf32>, vector<64x128xf32>, vector<64x128xf32> -> vector<64x128xf32>
    %3 = math.absf %2 : vector<64x128xf32>
    %cst_3 = arith.constant 1.000000e-15 : f32
    %4 = vector.broadcast %cst_3 : f32 to vector<64x128xf32>
    %5 = arith.addf %3, %4 : vector<64x128xf32>
    %6 = math.log %5 : vector<64x128xf32>
    %c0_4 = arith.constant 0 : index
    %c0_5 = arith.constant 0 : index
    %7 = vector.load %arg3[%c0_4, %c0_5] : memref<4x64xf32, #tpu.memory_space<vmem>>, vector<4x64xf32>
    %cst_6 = arith.constant dense<0.000000e+00> : vector<4x128xf32>
    %8 = tpu.matmul %7, %6, %cst_6 {dimension_numbers = #tpu.dot_dimension_numbers<[1], [0], [0], [1], [0, 0, 1, 1], [], []>} : vector<4x64xf32>, vector<64x128xf32>, vector<4x128xf32> -> vector<4x128xf32>
    %c0_7 = arith.constant 0 : index
    %c0_8 = arith.constant 0 : index
    %9 = vector.load %arg4[%c0_7, %c0_8] : memref<4x128xf32, #tpu.memory_space<vmem>>, vector<4x128xf32>
    tpu.vector_store %arg4[%c0_7, %c0_8], %8 {strides = array<i32>} : memref<4x128xf32, #tpu.memory_space<vmem>>, vector<4x128xf32>,
    return
  }
  func.func @transform_0(%arg0: i32) -> (i32, i32) {
    %c0_i32 = arith.constant 0 : i32
    %c0_i32_0 = arith.constant 0 : i32
    return %c0_i32, %arg0 : i32, i32
  }
  func.func @transform_1(%arg0: i32) -> (i32, i32) {
    %c0_i32 = arith.constant 0 : i32
    %c0_i32_0 = arith.constant 0 : i32
    %c0_i32_1 = arith.constant 0 : i32
    return %c0_i32, %c0_i32_0 : i32, i32
  }
  func.func @transform_2(%arg0: i32) -> (i32, i32) {
    %c0_i32 = arith.constant 0 : i32
    %c0_i32_0 = arith.constant 0 : i32
    %c0_i32_1 = arith.constant 0 : i32
    return %c0_i32, %c0_i32_0 : i32, i32
  }
  func.func @transform_3(%arg0: i32) -> (i32, i32) {
    %c0_i32 = arith.constant 0 : i32
    %c0_i32_0 = arith.constant 0 : i32
    return %c0_i32, %arg0 : i32, i32
  }
}

</mosaic_0001>

<bundles_post_ra>
// kernel: tpu_custom_call.1
= control target key start
LH: loop header
LB: loop body
LE: loop exit
PB: predicated region body
PF: predicated region fallthrough
CT: control target
= control target key end

     0   :  { %8 = vsyncpa [#allocation3], 0  ;;  %s935_s0 = inlined_call_operand.hbm [shape: f32[64,162], index: 0, kind: input, shape index: {}]   ;;  %s936_s1 = inlined_call_operand.hbm [shape: f32[64,64], index: 1, kind: input, shape index: {}]   ;;  %s937_s2 = inlined_call_operand.hbm [shape: f32[4,64], index: 2, kind: input, shape index: {}]   ;;  %s938_s3 = inlined_call_operand.hbm [shape: f32[4,162], index: 3, kind: output, shape index: {}]  }
   0x1   :  { %10 = vsyncpa [#allocation3 + $0x1], 0 }
   0x2   :  { %11 = vsyncpa [#allocation6], 0 }
   0x3   :  { %12 = vsyncpa [#allocation4], 0 }
   0x4   :  { %14 = vsyncpa [#allocation4 + $0x1], 0  ;;  %s779_s12 = smov 0   ;;  %s781_s13 = smov 0  }
   0x5   :  { %s783_s14 = smov 0   ;;  %s785_s15 = smov 0  }
   0x6 LB: > { %s800_s16 = sadd.s32 4294967295, %s752_s15   ;;  %s465_s17 = sadd.s32 4294967294, %s752_s15   ;;  %s752_s15 = sphi %s785_s15, %s948_s15   ;;  %s748_s14 = sphi %s783_s14, %s947_s14   ;;  %s744_s13 = sphi %s781_s13, %s946_s13   ;;  %s740_s12 = sphi %s779_s12, %s945_s12  }
   0x7   : > { %p40_p0 = scmp.ne.s32.totalorder %s744_s13, %s740_s12  ;;  %p41_p1 = scmp.eq.s32.totalorder %s800_s16, 0 }
   0x8   : > { %p106_p2 = scmp.eq.s32.totalorder %s800_s16, 1  ;;  %p112_p3 = scmp.eq.s32.totalorder %s465_s17, 1 }
   0x9   : > { %p809_p4 = por %p41_p1, %p40_p0  ;;  %p466_p5 = scmp.ge.s32.totalorder %s752_s15, 1 }
   0xa   : > { %p814_p6 = por %p112_p3, %p40_p0  ;;  %p119_p7 = scmp.lt.s32.totalorder %s752_s15, 3 }
   0xb   : > { %s130_s22 = sshll.u32 %s936_s1, 4  ;;  %s754_s24 = smov [#allocation5]   ;;  %s131_s22 = int_to_ptr.hbm [resolvable:$true] %s130_s22 }
   0xc   : > { %p822_p8 = pnand %p466_p5, %p119_p7  ;;  %s132_s25 = sshll.u32 %s754_s24, 4  ;;  %s133_s25 = int_to_ptr.vmem [resolvable:$true] %s132_s25 }
   0xd   : > { %s145_s28 = sshll.u32 %s937_s2, 4  ;;  %s755_s29 = smov 128   ;;  %s146_s28 = int_to_ptr.hbm [resolvable:$true] %s145_s28 }
   0xe   : > { %p518_p9 = pneg %p822_p8  ;;  %s756_s30 = smov 8  }
   0xf   : > { %s757_s4 = smov [#allocation7]   ;;  %s838_s6 = sadd.s32 1, %s752_s15  }
  0x10   : > { %p519_p10 = pnand %p518_p9, %p41_p1  ;;  %s147_s5 = sshll.u32 %s757_s4, 4  ;;  %s148_s5 = int_to_ptr.vmem [resolvable:$true] %s147_s5 }
  0x11   : > { %s27_s7 = sadd.s32 1, %s748_s14  ;;  %s24_s8 = ssub.s32 %s752_s15, %s838_s6 }
  0x12   : > { %521 = dma.hbm_to_vmem [thread:$0]  (!%p519_p10), %s131_s22, 1024, %s133_s25, [#allocation6], %s755_s29, %s755_s29, %s756_s30  }
  0x13   : > { %524 = dma.hbm_to_vmem [thread:$0]  (!%p519_p10), %s146_s28, 64, %s148_s5, [#allocation6]  }
  0x14   : > { %p34_p12 = scmp.ne.s32.totalorder %s748_s14, %s744_s13  ;;  %p25_p13 = scmp.eq.s32.totalorder %s24_s8, 0 }
  0x15   : > { %p35_p0 = scmp.eq.s32.totalorder %s752_s15, 0  ;;  %p535_p5 = scmp.lt.s32.totalorder %s752_s15, 2 }
  0x16   : > { %p848_p3 = por %p106_p2, %p34_p12  ;;  %s158_s11 = sand.u32 1, %s748_s14  }
  0x17   : > { %s854_s10 = scalar_select %p25_p13, %s748_s14, %s27_s7  }
  0x18   : > { %p36_p7 = por %p35_p0, %p34_p12  ;;  %s470_s17 = sshll.u32 %s158_s11, 6 }
  0x19   : > { %s471_s20 = sshll.u32 %s752_s15, 3  ;;  %s162_s25 = scalar_lea.vmem [#allocation2], %s470_s17 }
  0x1a   : > { %s166_s24 = scalar_lea.hbm %s935_s0, %s471_s20  ;;  %s169_s26 = sshll.u32 %s162_s25, 4  ;;  %s170_s26 = int_to_ptr.vmem [resolvable:$true] %s169_s26 }
  0x1b   : > { %s167_s27 = sshll.u32 %s166_s24, 4  ;;  %p861_p2 = pnand %p535_p5, %p36_p7  ;;  %s168_s27 = int_to_ptr.hbm [resolvable:$true] %s167_s27 }
  0x1c   : > { %s159_s4 = scalar_lea.sflag [#allocation3], %s158_s11  ;;  %s652_s5 = sshra.s32 %s168_s27, 4  ;;  %s653_s5 = int_to_ptr.hbm [resolvable:$true] %s652_s5 }
  0x1d   : > { %s654_s7 = scalar_lea.hbm %s653_s5, 64  ;;  %p656_p10 = pneg %p861_p2 }
  0x1e   : > { %p655_p9 = scmp.ne.s32.totalorder %s653_s5, %s654_s7  ;;  %s659_s20 = scalar_lea.hbm %s935_s0, 128 }
  0x1f   : > { %p660_p0 = scmp.lt.s32.totalorder %s653_s5, %s935_s0  ;;  %p661_p5 = scmp.lt.s32.totalorder %s659_s20, %s654_s7 }
  0x20   : > { %p657_p12 = pnand %p656_p10, %p655_p9 }
  0x21   : > { %p662_p7 = por %p661_p5, %p660_p0 }
  0x22   : > { %p658_p13 = pneg %p657_p12 }
  0x24   : > { %p663_p11 = pnand %p662_p7, %p658_p13 }
  0x26   : > { %666 = shalt.err (!%p663_p11)
}
  0x27   : > { %s758_s11 = smov 256   ;;  %181 = sbr.rel (%p822_p8) target bundleno = 368 (0x170), region = 32 }
  0x28   : > { %528 = dma.hbm_to_vmem [thread:$0]  (!%p861_p2), %s168_s27, 1024, %s170_s26, %s159_s4, %s758_s11, %s755_s29, %s756_s30  }
  0x29   : > { %s880_s24 = sand.u32 (!%p822_p8), 1, %s744_s13  }
  0x2a   : > { %s473_s25 = sshll.u32 (!%p822_p8), %s880_s24, 6  ;;  %s184_s5 = scalar_lea.sflag (!%p822_p8), [#allocation3], %s880_s24 }
  0x2b   : > { %s187_s7 = scalar_lea.vmem (!%p822_p8), [#allocation2], %s473_s25 }
  0x2c   : > { %727 = dma.done.wait (%p809_p4), %s184_s5, 1024  }
  0x2d   : > { %729 = vsyncadd (%p809_p4), %s184_s5, 4294966272 }
  0x2e   : > { %731 = dma.done.wait (%p41_p1), [#allocation6], 1088  }
  0x2f   : > { %733 = vsyncadd (%p41_p1), [#allocation6], 4294966208  ;;  %v236_v0 = vld [vmem:[%s187_s7 + $0x38] sm:$0xff]  ;;  %v235_v1 = vld [vmem:[%s187_s7 + $0x30] sm:$0xff]  ;;  %vm237_vm0 = vcmask 523264   ;;  %s476_s18 = sshll.u32 %s880_s24, 2 }
  0x30   : > { %491 = vmatpush.msra.mxu3 %v236_v0  ;;  %490 = vmatpush.msra.mxu2 %v236_v0  ;;  %v234_v2 = vld [vmem:[%s187_s7 + $0x28] sm:$0xff]  ;;  %v233_v3 = vld [vmem:[%s187_s7 + $0x20] sm:$0xff]  ;;  %v232_v4 = vld [vmem:[%s187_s7 + $0x18] sm:$0xff]  ;;  %s487_s23 = sshll.u32 %s800_s16, 2  ;;  %s220_s27 = scalar_lea.vmem [#allocation8], %s476_s18 }
  0x31   : > { %270 = vmatpush.msra.mxu0 %v236_v0  ;;  %v231_v5 = vld [vmem:[%s187_s7 + $0x10] sm:$0xff]  ;;  %v230_v6 = vld [vmem:[%s187_s7 + $0x8] sm:$0xff]  ;;  %v229_v7 = vld [vmem:[%s187_s7] sm:$0xff]  ;;  %s371_s26 = scalar_lea.hbm %s938_s3, %s487_s23  ;;  %s373_s28 = sshll.u32 %s220_s27, 4  ;;  %s374_s28 = int_to_ptr.vmem [resolvable:$true] %s373_s28 }
  0x32   : > { %493 = vmatpush.msra.mxu3 %v235_v1  ;;  %492 = vmatpush.msra.mxu2 %v235_v1  ;;  %v226_v8 = vld [vmem:[#allocation5 + $0x28] sm:$0xff]  ;;  %v223_v9 = vld [vmem:[#allocation5 + $0x10] sm:$0xff]  ;;  %v221_v10 = vld [vmem:[#allocation5] sm:$0xff]  ;;  %s375_s4 = sshll.u32 %s371_s26, 4  ;;  %s361_s8 = scalar_lea.sflag [#allocation4], %s880_s24  ;;  %s376_s4 = int_to_ptr.hbm [resolvable:$true] %s375_s4 }
  0x33   : > { %271 = vmatpush.msra.mxu0 %v235_v1  ;;  %v227_v11 = vld [vmem:[#allocation5 + $0x30] sm:$0xff]  ;;  %v224_v12 = vld [vmem:[#allocation5 + $0x18] sm:$0xff]  ;;  %v222_v13 = vld [vmem:[#allocation5 + $0x8] sm:$0xff]  ;;  %s696_s17 = sshra.s32 %s376_s4, 4  ;;  %s702_s22 = scalar_lea.hbm %s938_s3, 8  ;;  %s697_s17 = int_to_ptr.hbm [resolvable:$true] %s696_s17 }
  0x34   : > { %495 = vmatpush.msra.mxu3 %v234_v2  ;;  %494 = vmatpush.msra.mxu2 %v234_v2  ;;  %v228_v14 = vld [vmem:[#allocation5 + $0x38] sm:$0xff]  ;;  %v225_v15 = vld [vmem:[#allocation5 + $0x20] sm:$0xff]  ;;  %s698_s20 = scalar_lea.hbm %s697_s17, 4  ;;  %p703_p11 = scmp.lt.s32.totalorder %s697_s17, %s938_s3 }
  0x35   : > { %272 = vmatpush.msra.mxu0 %v234_v2  ;;  %v335_v56 = vld [vmem:[#allocation7] sm:$0xf]  ;;  %p699_p1 = scmp.ne.s32.totalorder %s697_s17, %s698_s20  ;;  %p704_p2 = scmp.lt.s32.totalorder %s702_s22, %s698_s20 }
  0x36   : > { %497 = vmatpush.msra.mxu3 %v233_v3  ;;  %496 = vmatpush.msra.mxu2 %v233_v3 }
  0x37   : > { %273 = vmatpush.msra.mxu0 %v233_v3  ;;  %p700_p4 = pnand %p699_p1, %p848_p3  ;;  %p705_p9 = por %p704_p2, %p703_p11 }
  0x38   : > { %499 = vmatpush.msra.mxu3 %v232_v4  ;;  %498 = vmatpush.msra.mxu2 %v232_v4 }
  0x39   : > { %274 = vmatpush.msra.mxu0 %v232_v4  ;;  %p701_p8 = pneg %p700_p4 }
  0x3a   : > { %501 = vmatpush.msra.mxu3 %v231_v5  ;;  %500 = vmatpush.msra.mxu2 %v231_v5 }
  0x3b   : > { %275 = vmatpush.msra.mxu0 %v231_v5  ;;  %p706_p10 = pnand %p705_p9, %p701_p8 }
  0x3c   : > { %503 = vmatpush.msra.mxu3 %v230_v6  ;;  %502 = vmatpush.msra.mxu2 %v230_v6 }
  0x3d   : > { %276 = vmatpush.msra.mxu0 %v230_v6 }
  0x3e   : > { %505 = vmatpush.msra.mxu3 %v229_v7  ;;  %504 = vmatpush.msra.mxu2 %v229_v7 }
  0x3f   : > { %482 = vmatmul.msk.f32.vlgmr.msra.gmra.mxu3 %vm237_vm0, %v226_v8  ;;  %479 = vmatmul.msk.f32.vlgmr.msra.gmra.mxu2 %vm237_vm0, %v223_v9 }
  0x40   : > { %277 = vmatpush.msra.mxu0 %v229_v7 }
  0x41   : > { %477 = vmatmul.msk.f32.vlgmr.msra.gmra.mxu0 %vm237_vm0, %v221_v10 }
  0x47   : > { %483 = vmatmul.msk.f32.gmra.mxu3 %vm237_vm0, %v227_v11  ;;  %480 = vmatmul.msk.f32.gmra.mxu2 %vm237_vm0, %v224_v12 }
  0x49   : > { %478 = vmatmul.msk.f32.gmra.mxu0 %vm237_vm0, %v222_v13 }
  0x4f   : > { %484 = vmatmul.msk.f32.gmra.mxu3 %vm237_vm0, %v228_v14  ;;  %481 = vmatmul.msk.f32.gmra.mxu2 %vm237_vm0, %v225_v15 }
  0xbe   : > { %v279_v18 = vpop.f32.mrf.mxu0 }
  0xbf   : > { %v303_v37 = vand.u32 2147483647, %v279_v18 }
  0xc1   : > { %v311_v44 = vadd.f32 1e-15, %v303_v37 }
  0xc2   : > { %v294_v16 = vpop.f32.mrf.mxu3  ;;  %v285_v17 = vpop.f32.mrf.mxu2 }
  0xc3   : > { %v308_v22 = vand.u32 2147483647, %v294_v16  ;;  %v305_v33 = vand.u32 2147483647, %v285_v17 }
  0xc5   : > { %v316_v28 = vadd.f32 1e-15, %v308_v22  ;;  %v313_v36 = vadd.f32 1e-15, %v305_v33 }
  0xc6   : > { %v282_v29 = vpop.f32.mrf.mxu0 }
  0xc7   : > { %v304_v34 = vand.u32 2147483647, %v282_v29 }
  0xc9   : > { %v312_v38 = vadd.f32 1e-15, %v304_v34 }
  0xca   : > { %v297_v19 = vpop.f32.mrf.mxu3  ;;  %v288_v20 = vpop.f32.mrf.mxu2 }
  0xcb   : > { %v309_v21 = vand.u32 2147483647, %v297_v19  ;;  %v306_v30 = vand.u32 2147483647, %v288_v20 }
  0xcd   : > { %v317_v23 = vadd.f32 1e-15, %v309_v21  ;;  %v314_v35 = vadd.f32 1e-15, %v306_v30 }
  0xcf   : > { %576 = vlog2.f32 %v317_v23 }
  0xd2   : > { %v300_v24 = vpop.f32.mrf.mxu3  ;;  %v291_v25 = vpop.f32.mrf.mxu2 }
  0xd3   : > { %v310_v26 = vand.u32 2147483647, %v300_v24  ;;  %v307_v27 = vand.u32 2147483647, %v291_v25 }
  0xd5   : > { %v318_v31 = vadd.f32 1e-15, %v310_v26  ;;  %v315_v32 = vadd.f32 1e-15, %v307_v27  ;;  %v577_v39 = vpop.eup %576 }
  0xd6   : > { %v332_v45 = vmul.f32 0.6931472, %v577_v39 }
  0xd7   : > { %578 = vlog2.f32 %v318_v31 }
  0xd8   : > { %580 = vlog2.f32 %v316_v28 }
  0xd9   : > { %582 = vlog2.f32 %v315_v32 }
  0xda   : > { %584 = vlog2.f32 %v314_v35 }
  0xdb   : > { %586 = vlog2.f32 %v313_v36 }
  0xdc   : > { %588 = vlog2.f32 %v312_v38 }
  0xdd   : > { %v579_v40 = vpop.eup %578  ;;  %590 = vlog2.f32 %v311_v44 }
  0xde   : > { %v581_v41 = vpop.eup %580  ;;  %v334_v42 = vmul.f32 0.6931472, %v579_v40 }
  0xdf   : > { %v583_v43 = vpop.eup %582  ;;  %v330_v46 = vmul.f32 0.6931472, %v581_v41 }
  0xe0   : > { %347 = vmatpush.msra.mxu1 %v334_v42  ;;  %v328_v47 = vmul.f32 0.6931472, %v583_v43  ;;  %v585_v48 = vpop.eup %584 }
  0xe1   : > { %v587_v49 = vpop.eup %586  ;;  %v326_v51 = vmul.f32 0.6931472, %v585_v48 }
  0xe2   : > { %348 = vmatpush.msra.mxu1 %v332_v45  ;;  %v589_v50 = vpop.eup %588  ;;  %v324_v52 = vmul.f32 0.6931472, %v587_v49 }
  0xe3   : > { %v322_v53 = vmul.f32 0.6931472, %v589_v50  ;;  %v591_v54 = vpop.eup %590 }
  0xe4   : > { %349 = vmatpush.msra.mxu1 %v330_v46  ;;  %v320_v55 = vmul.f32 0.6931472, %v591_v54 }
  0xe6   : > { %350 = vmatpush.msra.mxu1 %v328_v47 }
  0xe8   : > { %351 = vmatpush.msra.mxu1 %v326_v51 }
  0xea   : > { %352 = vmatpush.msra.mxu1 %v324_v52 }
  0xec   : > { %353 = vmatpush.msra.mxu1 %v322_v53 }
  0xee   : > { %354 = vmatpush.msra.mxu1 %v320_v55 }
  0xef   : > { %485 = vmatmul.msk.f32.vlgmr.msra.gmra.mxu1 %vm237_vm0, %v335_v56 }
 0x16c   : > { %v356_v57 = vpop.f32.mrf.mxu1 }
 0x16d   : > { %359 = vst [vmem:[%s220_s27] sm:$0xf] %v356_v57 }
 0x16e   : > { %709 = shalt.err (!%p706_p10)
}
 0x16f   : > { %516 = dma.vmem_to_hbm [thread:$0]  (%p848_p3), %s374_s28, 64, %s376_s4, %s361_s8  }
 0x170 PF: > { %s387_s24 = sand.u32 1, %s740_s12   ;;  %p944_p12 = scmp.ge.s32.totalorder %s752_s15, 2 }
 0x171   : > { %s388_s5 = scalar_lea.sflag [#allocation4], %s387_s24 }
 0x172   : > { %p530_p13 = pnand %p944_p12, %p814_p6 }
 0x174   : > { %p531_p0 = pneg %p530_p13 }
 0x176   : > { %735 = dma.done.wait (%p531_p0), %s388_s5, 64  }
 0x177   : > { %737 = vsyncadd (%p531_p0), %s388_s5, 4294967232  ;;  %p17_p5 = scmp.ge.s32.totalorder %s838_s6, 4   ;;  %s945_s12 = smov %s744_s13 }
 0x178   : > { %s946_s13 = smov %s748_s14  ;;  %s947_s14 = smov %s854_s10 }
 0x179   : > { %s948_s15 = smov %s838_s6  ;;  %19 = sbr.rel (!%p17_p5) target bundleno = 6 (0x6), region = 85 }
 0x17e   :  { %394 = vsyncpa [#allocation3], 1 }
 0x17f   :  { %396 = vsyncpa [#allocation3 + $0x1], 1 }
 0x180   :  { %397 = vsyncpa [#allocation6], 1 }
 0x181   :  { %398 = vsyncpa [#allocation4], 1 }
 0x182   :  { %400 = vsyncpa [#allocation4 + $0x1], 1 }

</bundles_post_ra>
